<compile_context>
chip_gen: v7x
topology: tpu7x:2x2x1
jax: 0.10.0
libtpu: 0.0.40
codegen_flags: <defaults>
</compile_context>

<pallas_src>
import jax
import jax.numpy as jnp
from jax.experimental import pallas as pl
from jax.experimental.pallas import tpu as pltpu


_H1 = 64        # shared hidden 1
_H2 = 32        # shared hidden 2
_N_HOUR = 24
_N_DAY = 7


def _round_up(x, m):
    return ((x + m - 1) // m) * m


def _timing_predictor_kernel(x_ref, w1_ref, w2_ref, wh_ref, wd_ref,
                             b1_ref, b2_ref, bh_ref, bd_ref,
                             hour_ref, day_ref):
    """One (tm, D) batch tile -> (tm, 24) hour probs + (tm, 7) day probs."""
    x = x_ref[...]

    # shared MLP (Dropout == identity in eval mode); MXU accumulates in f32
    h1 = jnp.dot(x, w1_ref[...], preferred_element_type=jnp.float32) + b1_ref[...]
    h1 = jnp.maximum(h1, 0.0)
    h2 = jnp.dot(h1, w2_ref[...], preferred_element_type=jnp.float32) + b2_ref[...]
    h2 = jnp.maximum(h2, 0.0)

    # hour head: Linear(32,24) + row softmax (full last dim -> no masks/selects)
    hl = jnp.dot(h2, wh_ref[...], preferred_element_type=jnp.float32) + bh_ref[...]
    hl = hl - jnp.max(hl, axis=-1, keepdims=True)
    he = jnp.exp(hl)
    hour_ref[...] = (he * pl.reciprocal(jnp.sum(he, axis=-1, keepdims=True),
                                        approx=False)).astype(hour_ref.dtype)

    # day head: Linear(32,7) + row softmax
    dl = jnp.dot(h2, wd_ref[...], preferred_element_type=jnp.float32) + bd_ref[...]
    dl = dl - jnp.max(dl, axis=-1, keepdims=True)
    de = jnp.exp(dl)
    day_ref[...] = (de * pl.reciprocal(jnp.sum(de, axis=-1, keepdims=True),
                                       approx=False)).astype(day_ref.dtype)


def optimal_timing_predictor(x, params, *, block_rows=1024):
    """x: [B, D_in] (f32 or bf16). params: dict of (in,out)-layout weights/biases.
    Returns (hour_probs [B,24], day_probs [B,7]) in float32."""
    B, d_in = x.shape

    # first-layer weight matches x's dtype (bf16 x -> native bf16 MXU feed)
    w1c = params["w1"].astype(x.dtype)
    w2c = params["w2"].astype(jnp.float32)
    whc = params["wh"].astype(jnp.float32)
    wdc = params["wd"].astype(jnp.float32)
    b1 = params["b1"].reshape(1, _H1).astype(jnp.float32)
    b2 = params["b2"].reshape(1, _H2).astype(jnp.float32)
    bh = params["bh"].reshape(1, _N_HOUR).astype(jnp.float32)
    bd = params["bd"].reshape(1, _N_DAY).astype(jnp.float32)

    # ---- batch tile selection (no jnp.pad; ragged last block handled by grid) ----
    tm = min(block_rows, _round_up(B, 8))
    if B > 8:
        # guarantee >=2 grid steps: shards the "parallel" axis across v7x's two
        # TensorCores and enables prefetch/writeback overlap
        tm = min(tm, _round_up(pl.cdiv(B, 2), 8))
    tm = max(tm, 8)

    def _vmem_est(t):
        stream = 2 * (t * d_in * x.dtype.itemsize            # x, double-buffered
                      + t * (_N_HOUR + _N_DAY) * 4)           # outputs, double-buffered
        temps = 2 * t * (_H1 + _H2 + _N_HOUR + _N_DAY) * 4    # h1/h2/logits/exp temporaries
        weights = (w1c.size * w1c.dtype.itemsize
                   + (w2c.size + whc.size + wdc.size) * 4
                   + (_H1 + _H2 + _N_HOUR + _N_DAY) * 4)
        return stream + temps + weights

    budget = 40 * 1024 * 1024          # conservative scoped-VMEM budget (all gens)
    while tm > 8 and _vmem_est(tm) > budget:
        tm = _round_up(tm // 2, 8)

    grid = (pl.cdiv(B, tm),)
    vmem_limit = int(min(max(_vmem_est(tm) + (4 << 20), 16 << 20), 56 << 20))

    flops = 2 * B * (d_in * _H1 + _H1 * _H2 + _H2 * (_N_HOUR + _N_DAY))
    bytes_accessed = int(
        B * d_in * x.dtype.itemsize                    # x stream (dominant)
        + B * (_N_HOUR + _N_DAY) * 4                   # lane-dense outputs
        + w1c.size * w1c.dtype.itemsize
        + (w2c.size + whc.size + wdc.size + _H1 + _H2 + _N_HOUR + _N_DAY) * 4)

    hour_probs, day_probs = pl.pallas_call(
        _timing_predictor_kernel,
        out_shape=(jax.ShapeDtypeStruct((B, _N_HOUR), jnp.float32),
                   jax.ShapeDtypeStruct((B, _N_DAY), jnp.float32)),
        grid=grid,
        in_specs=[
            pl.BlockSpec((tm, d_in), lambda i: (i, 0)),   # streamed batch tile
            pl.BlockSpec(w1c.shape, lambda i: (0, 0)),    # VMEM-resident weights
            pl.BlockSpec(w2c.shape, lambda i: (0, 0)),
            pl.BlockSpec(whc.shape, lambda i: (0, 0)),
            pl.BlockSpec(wdc.shape, lambda i: (0, 0)),
            pl.BlockSpec(b1.shape, lambda i: (0, 0)),     # VMEM-resident biases
            pl.BlockSpec(b2.shape, lambda i: (0, 0)),
            pl.BlockSpec(bh.shape, lambda i: (0, 0)),
            pl.BlockSpec(bd.shape, lambda i: (0, 0)),
        ],
        out_specs=(
            pl.BlockSpec((tm, _N_HOUR), lambda i: (i, 0)),
            pl.BlockSpec((tm, _N_DAY), lambda i: (i, 0)),
        ),
        compiler_params=pltpu.CompilerParams(
            dimension_semantics=("parallel",),            # megacore sharding on v7x
            vmem_limit_bytes=vmem_limit),
        cost_estimate=pl.CostEstimate(
            flops=flops,
            transcendentals=B * (_N_HOUR + _N_DAY),
            bytes_accessed=bytes_accessed),
    )(x, w1c, w2c, whc, wdc, b1, b2, bh, bd)

    return hour_probs, day_probs


def init_params(key, input_size, hidden_sizes=(64, 32)):
    """Deterministic synthetic parameters, (in, out) layout (shapes match module)."""
    keys = jax.random.split(key, 8)
    h1, h2 = hidden_sizes
    scale = lambda fan_in: 1.0 / jnp.sqrt(jnp.float32(fan_in))
    return {
        "w1": jax.random.normal(keys[0], (input_size, h1), jnp.float32) * scale(input_size),
        "b1": jax.random.normal(keys[1], (1, h1), jnp.float32) * 0.01,
        "w2": jax.random.normal(keys[2], (h1, h2), jnp.float32) * scale(h1),
        "b2": jax.random.normal(keys[3], (1, h2), jnp.float32) * 0.01,
        "wh": jax.random.normal(keys[4], (h2, 24), jnp.float32) * scale(h2),
        "bh": jax.random.normal(keys[5], (1, 24), jnp.float32) * 0.01,
        "wd": jax.random.normal(keys[6], (h2, 7), jnp.float32) * scale(h2),
        "bd": jax.random.normal(keys[7], (1, 7), jnp.float32) * 0.01,
    }


def _reference(x, params):
    """Pure-JAX reference of the PyTorch forward (eval mode)."""
    hp = jax.lax.Precision.HIGHEST
    xf = x.astype(jnp.float32)
    h1 = jnp.maximum(jnp.dot(xf, params["w1"], precision=hp) + params["b1"].reshape(1, -1), 0.0)
    h2 = jnp.maximum(jnp.dot(h1, params["w2"], precision=hp) + params["b2"].reshape(1, -1), 0.0)
    hour = jax.nn.softmax(jnp.dot(h2, params["wh"], precision=hp) + params["bh"].reshape(1, -1), axis=1)
    day = jax.nn.softmax(jnp.dot(h2, params["wd"], precision=hp) + params["bd"].reshape(1, -1), axis=1)
    return hour, day


if __name__ == "__main__":
    key = jax.random.PRNGKey(0)
    k_x, k_p = jax.random.split(key)

    # batch=20 (not a multiple of 8) exercises the ragged last block and >=2 grid steps
    batch, input_size = 20, 32
    x = jax.random.normal(k_x, (batch, input_size), jnp.float32)
    params = init_params(k_p, input_size)

    hour_probs, day_probs = jax.jit(optimal_timing_predictor)(x, params)
    jax.block_until_ready((hour_probs, day_probs))

    # shape + correctness checks against a pure-JAX reference
    assert hour_probs.shape == (batch, 24)
    assert day_probs.shape == (batch, 7)
    ref_hour, ref_day = _reference(x, params)
    assert jnp.allclose(hour_probs, ref_hour, atol=1e-4, rtol=1e-3)
    assert jnp.allclose(day_probs, ref_day, atol=1e-4, rtol=1e-3)
    assert jnp.allclose(jnp.sum(hour_probs, axis=1), 1.0, atol=1e-5)
    assert jnp.allclose(jnp.sum(day_probs, axis=1), 1.0, atol=1e-5)
    assert bool(jnp.all(hour_probs >= 0.0)) and bool(jnp.all(day_probs >= 0.0))

    print("KERNEL_OK")
</pallas_src>

<mosaic_0001>
module attributes {stable_mosaic.version = 11 : i64} {
  func.func @_timing_predictor_kernel(%arg0: i32, %arg1: memref<16x32xf32, #tpu.memory_space<vmem>>, %arg2: memref<32x64xf32, #tpu.memory_space<vmem>>, %arg3: memref<64x32xf32, #tpu.memory_space<vmem>>, %arg4: memref<32x24xf32, #tpu.memory_space<vmem>>, %arg5: memref<32x7xf32, #tpu.memory_space<vmem>>, %arg6: memref<1x64xf32, #tpu.memory_space<vmem>>, %arg7: memref<1x32xf32, #tpu.memory_space<vmem>>, %arg8: memref<1x24xf32, #tpu.memory_space<vmem>>, %arg9: memref<1x7xf32, #tpu.memory_space<vmem>>, %arg10: memref<16x24xf32, #tpu.memory_space<vmem>>, %arg11: memref<16x7xf32, #tpu.memory_space<vmem>>) attributes {dimension_semantics = [#tpu.dimension_semantics<parallel>], iteration_bounds = array<i64: 2>, scalar_prefetch = 0 : i64, scratch_operands = 0 : i64, tpu.core_type = #tpu.core_type<tc>, window_params = [{transform_indices = @transform_0, window_bounds = array<i64: 16, 32>}, {pipeline_mode = #tpu.pipeline_mode<synchronous>, transform_indices = @transform_1, window_bounds = array<i64: 32, 64>}, {pipeline_mode = #tpu.pipeline_mode<synchronous>, transform_indices = @transform_2, window_bounds = array<i64: 64, 32>}, {pipeline_mode = #tpu.pipeline_mode<synchronous>, transform_indices = @transform_3, window_bounds = array<i64: 32, 24>}, {pipeline_mode = #tpu.pipeline_mode<synchronous>, transform_indices = @transform_4, window_bounds = array<i64: 32, 7>}, {pipeline_mode = #tpu.pipeline_mode<synchronous>, transform_indices = @transform_5, window_bounds = array<i64: 1, 64>}, {pipeline_mode = #tpu.pipeline_mode<synchronous>, transform_indices = @transform_6, window_bounds = array<i64: 1, 32>}, {pipeline_mode = #tpu.pipeline_mode<synchronous>, transform_indices = @transform_7, window_bounds = array<i64: 1, 24>}, {pipeline_mode = #tpu.pipeline_mode<synchronous>, transform_indices = @transform_8, window_bounds = array<i64: 1, 7>}, {transform_indices = @transform_9, window_bounds = array<i64: 16, 24>}, {transform_indices = @transform_10, window_bounds = array<i64: 16, 7>}]} {
    %c0 = arith.constant 0 : index
    %c0_0 = arith.constant 0 : index
    %0 = vector.load %arg1[%c0, %c0_0] : memref<16x32xf32, #tpu.memory_space<vmem>>, vector<16x32xf32>
    %c0_1 = arith.constant 0 : index
    %c0_2 = arith.constant 0 : index
    %1 = vector.load %arg2[%c0_1, %c0_2] : memref<32x64xf32, #tpu.memory_space<vmem>>, vector<32x64xf32>
    %cst = arith.constant dense<0.000000e+00> : vector<16x64xf32>
    %2 = tpu.matmul %0, %1, %cst {dimension_numbers = #tpu.dot_dimension_numbers<[1], [0], [0], [1], [0, 0, 1, 1], [], []>} : vector<16x32xf32>, vector<32x64xf32>, vector<16x64xf32> -> vector<16x64xf32>
    %c0_3 = arith.constant 0 : index
    %c0_4 = arith.constant 0 : index
    %3 = vector.load %arg6[%c0_3, %c0_4] : memref<1x64xf32, #tpu.memory_space<vmem>>, vector<1x64xf32>
    %4 = vector.broadcast %3 : vector<1x64xf32> to vector<16x64xf32>
    %5 = arith.addf %2, %4 : vector<16x64xf32>
    %cst_5 = arith.constant 0.000000e+00 : f32
    %6 = vector.broadcast %cst_5 : f32 to vector<16x64xf32>
    %7 = arith.maximumf %5, %6 : vector<16x64xf32>
    %c0_6 = arith.constant 0 : index
    %c0_7 = arith.constant 0 : index
    %8 = vector.load %arg3[%c0_6, %c0_7] : memref<64x32xf32, #tpu.memory_space<vmem>>, vector<64x32xf32>
    %cst_8 = arith.constant dense<0.000000e+00> : vector<16x32xf32>
    %9 = tpu.matmul %7, %8, %cst_8 {dimension_numbers = #tpu.dot_dimension_numbers<[1], [0], [0], [1], [0, 0, 1, 1], [], []>} : vector<16x64xf32>, vector<64x32xf32>, vector<16x32xf32> -> vector<16x32xf32>
    %c0_9 = arith.constant 0 : index
    %c0_10 = arith.constant 0 : index
    %10 = vector.load %arg7[%c0_9, %c0_10] : memref<1x32xf32, #tpu.memory_space<vmem>>, vector<1x32xf32>
    %11 = vector.broadcast %10 : vector<1x32xf32> to vector<16x32xf32>
    %12 = arith.addf %9, %11 : vector<16x32xf32>
    %cst_11 = arith.constant 0.000000e+00 : f32
    %13 = vector.broadcast %cst_11 : f32 to vector<16x32xf32>
    %14 = arith.maximumf %12, %13 : vector<16x32xf32>
    %c0_12 = arith.constant 0 : index
    %c0_13 = arith.constant 0 : index
    %15 = vector.load %arg4[%c0_12, %c0_13] : memref<32x24xf32, #tpu.memory_space<vmem>>, vector<32x24xf32>
    %cst_14 = arith.constant dense<0.000000e+00> : vector<16x24xf32>
    %16 = tpu.matmul %14, %15, %cst_14 {dimension_numbers = #tpu.dot_dimension_numbers<[1], [0], [0], [1], [0, 0, 1, 1], [], []>} : vector<16x32xf32>, vector<32x24xf32>, vector<16x24xf32> -> vector<16x24xf32>
    %c0_15 = arith.constant 0 : index
    %c0_16 = arith.constant 0 : index
    %17 = vector.load %arg8[%c0_15, %c0_16] : memref<1x24xf32, #tpu.memory_space<vmem>>, vector<1x24xf32>
    %18 = vector.broadcast %17 : vector<1x24xf32> to vector<16x24xf32>
    %19 = arith.addf %16, %18 : vector<16x24xf32>
    %cst_17 = arith.constant dense<0xFF800000> : vector<16xf32>
    %20 = vector.multi_reduction <maximumf>, %19, %cst_17 [1] : vector<16x24xf32> to vector<16xf32>
    %21 = vector.shape_cast %20 : vector<16xf32> to vector<16x1xf32>
    %22 = vector.broadcast %21 : vector<16x1xf32> to vector<16x24xf32>
    %23 = arith.subf %19, %22 : vector<16x24xf32>
    %24 = math.exp %23 : vector<16x24xf32>
    %cst_18 = arith.constant dense<0.000000e+00> : vector<16xf32>
    %25 = vector.multi_reduction <add>, %24, %cst_18 [1] : vector<16x24xf32> to vector<16xf32>
    %26 = vector.shape_cast %25 : vector<16xf32> to vector<16x1xf32>
    %27 = tpu.reciprocal %26 : vector<16x1xf32> -> vector<16x1xf32>
    %28 = vector.broadcast %27 : vector<16x1xf32> to vector<16x24xf32>
    %29 = arith.mulf %24, %28 : vector<16x24xf32>
    %c0_19 = arith.constant 0 : index
    %c0_20 = arith.constant 0 : index
    %30 = vector.load %arg10[%c0_19, %c0_20] : memref<16x24xf32, #tpu.memory_space<vmem>>, vector<16x24xf32>
    tpu.vector_store %arg10[%c0_19, %c0_20], %29 {strides = array<i32>} : memref<16x24xf32, #tpu.memory_space<vmem>>, vector<16x24xf32>,
    %c0_21 = arith.constant 0 : index
    %c0_22 = arith.constant 0 : index
    %31 = vector.load %arg5[%c0_21, %c0_22] : memref<32x7xf32, #tpu.memory_space<vmem>>, vector<32x7xf32>
    %cst_23 = arith.constant dense<0.000000e+00> : vector<16x7xf32>
    %32 = tpu.matmul %14, %31, %cst_23 {dimension_numbers = #tpu.dot_dimension_numbers<[1], [0], [0], [1], [0, 0, 1, 1], [], []>} : vector<16x32xf32>, vector<32x7xf32>, vector<16x7xf32> -> vector<16x7xf32>
    %c0_24 = arith.constant 0 : index
    %c0_25 = arith.constant 0 : index
    %33 = vector.load %arg9[%c0_24, %c0_25] : memref<1x7xf32, #tpu.memory_space<vmem>>, vector<1x7xf32>
    %34 = vector.broadcast %33 : vector<1x7xf32> to vector<16x7xf32>
    %35 = arith.addf %32, %34 : vector<16x7xf32>
    %cst_26 = arith.constant dense<0xFF800000> : vector<16xf32>
    %36 = vector.multi_reduction <maximumf>, %35, %cst_26 [1] : vector<16x7xf32> to vector<16xf32>
    %37 = vector.shape_cast %36 : vector<16xf32> to vector<16x1xf32>
    %38 = vector.broadcast %37 : vector<16x1xf32> to vector<16x7xf32>
    %39 = arith.subf %35, %38 : vector<16x7xf32>
    %40 = math.exp %39 : vector<16x7xf32>
    %cst_27 = arith.constant dense<0.000000e+00> : vector<16xf32>
    %41 = vector.multi_reduction <add>, %40, %cst_27 [1] : vector<16x7xf32> to vector<16xf32>
    %42 = vector.shape_cast %41 : vector<16xf32> to vector<16x1xf32>
    %43 = tpu.reciprocal %42 : vector<16x1xf32> -> vector<16x1xf32>
    %44 = vector.broadcast %43 : vector<16x1xf32> to vector<16x7xf32>
    %45 = arith.mulf %40, %44 : vector<16x7xf32>
    %c0_28 = arith.constant 0 : index
    %c0_29 = arith.constant 0 : index
    %46 = vector.load %arg11[%c0_28, %c0_29] : memref<16x7xf32, #tpu.memory_space<vmem>>, vector<16x7xf32>
    tpu.vector_store %arg11[%c0_28, %c0_29], %45 {strides = array<i32>} : memref<16x7xf32, #tpu.memory_space<vmem>>, vector<16x7xf32>,
    return
  }
  func.func @transform_0(%arg0: i32) -> (i32, i32) {
    %c0_i32 = arith.constant 0 : i32
    %c0_i32_0 = arith.constant 0 : i32
    return %arg0, %c0_i32 : i32, i32
  }
  func.func @transform_1(%arg0: i32) -> (i32, i32) {
    %c0_i32 = arith.constant 0 : i32
    %c0_i32_0 = arith.constant 0 : i32
    %c0_i32_1 = arith.constant 0 : i32
    return %c0_i32, %c0_i32_0 : i32, i32
  }
  func.func @transform_2(%arg0: i32) -> (i32, i32) {
    %c0_i32 = arith.constant 0 : i32
    %c0_i32_0 = arith.constant 0 : i32
    %c0_i32_1 = arith.constant 0 : i32
    return %c0_i32, %c0_i32_0 : i32, i32
  }
  func.func @transform_3(%arg0: i32) -> (i32, i32) {
    %c0_i32 = arith.constant 0 : i32
    %c0_i32_0 = arith.constant 0 : i32
    %c0_i32_1 = arith.constant 0 : i32
    return %c0_i32, %c0_i32_0 : i32, i32
  }
  func.func @transform_4(%arg0: i32) -> (i32, i32) {
    %c0_i32 = arith.constant 0 : i32
    %c0_i32_0 = arith.constant 0 : i32
    %c0_i32_1 = arith.constant 0 : i32
    return %c0_i32, %c0_i32_0 : i32, i32
  }
  func.func @transform_5(%arg0: i32) -> (i32, i32) {
    %c0_i32 = arith.constant 0 : i32
    %c0_i32_0 = arith.constant 0 : i32
    %c0_i32_1 = arith.constant 0 : i32
    return %c0_i32, %c0_i32_0 : i32, i32
  }
  func.func @transform_6(%arg0: i32) -> (i32, i32) {
    %c0_i32 = arith.constant 0 : i32
    %c0_i32_0 = arith.constant 0 : i32
    %c0_i32_1 = arith.constant 0 : i32
    return %c0_i32, %c0_i32_0 : i32, i32
  }
  func.func @transform_7(%arg0: i32) -> (i32, i32) {
    %c0_i32 = arith.constant 0 : i32
    %c0_i32_0 = arith.constant 0 : i32
    %c0_i32_1 = arith.constant 0 : i32
    return %c0_i32, %c0_i32_0 : i32, i32
  }
  func.func @transform_8(%arg0: i32) -> (i32, i32) {
    %c0_i32 = arith.constant 0 : i32
    %c0_i32_0 = arith.constant 0 : i32
    %c0_i32_1 = arith.constant 0 : i32
    return %c0_i32, %c0_i32_0 : i32, i32
  }
  func.func @transform_9(%arg0: i32) -> (i32, i32) {
    %c0_i32 = arith.constant 0 : i32
    %c0_i32_0 = arith.constant 0 : i32
    return %arg0, %c0_i32 : i32, i32
  }
  func.func @transform_10(%arg0: i32) -> (i32, i32) {
    %c0_i32 = arith.constant 0 : i32
    %c0_i32_0 = arith.constant 0 : i32
    return %arg0, %c0_i32 : i32, i32
  }
}

</mosaic_0001>

<bundles_post_ra>
// kernel: optimal_timing_predictor.1
= control target key start
LH: loop header
LB: loop body
LE: loop exit
PB: predicated region body
PF: predicated region fallthrough
CT: control target
= control target key end

     0   :  { %s1815_s0 = inlined_call_operand.vmem [shape: f32[20,32], index: 0, kind: input, shape index: {}]   ;;  %s1816_s1 = inlined_call_operand.vmem [shape: f32[32,64], index: 1, kind: input, shape index: {}]   ;;  %s1817_s2 = inlined_call_operand.vmem [shape: f32[64,32], index: 2, kind: input, shape index: {}]   ;;  %s1818_s3 = inlined_call_operand.vmem [shape: f32[32,24], index: 3, kind: input, shape index: {}]   ;;  %s1819_s4 = inlined_call_operand.vmem [shape: f32[32,7], index: 4, kind: input, shape index: {}]   ;;  %s1820_s5 = inlined_call_operand.vmem [shape: f32[1,64], index: 5, kind: input, shape index: {}]   ;;  %s1821_s6 = inlined_call_operand.vmem [shape: f32[1,32], index: 6, kind: input, shape index: {}]   ;;  %s1822_s7 = inlined_call_operand.vmem [shape: f32[1,24], index: 7, kind: input, shape index: {}]   ;;  %s1823_s8 = inlined_call_operand.vmem [shape: f32[1,7], index: 8, kind: input, shape index: {}]   ;;  %s1824_s9 = inlined_call_operand.hbm [shape: f32[20,24], index: 9, kind: output, shape index: {0}]   ;;  %s1825_s10 = inlined_call_operand.vmem [shape: f32[20,7], index: 10, kind: output, shape index: {1}]  }
   0x1   :  { %1826 = sst [smem:[#allocation6_spill]] %s1815_s0 }
   0x2   :  { %1827 = sst [smem:[#allocation7_spill]] %s1816_s1 }
   0x3   :  { %1828 = sst [smem:[#allocation8_spill]] %s1817_s2 }
   0x4   :  { %16 = vsyncpa [#allocation3], 0 }
   0x5   :  { %18 = vsyncpa [#allocation3 + $0x1], 0  ;;  %s1573_s13 = smov 0   ;;  %s1575_s14 = smov 0  }
   0x6   :  { %s1577_s15 = smov 0   ;;  %s1579_s16 = smov 0  }
   0x7 LB: > { %s1594_s17 = sadd.s32 4294967295, %s1481_s16   ;;  %s1099_s18 = sadd.s32 4294967294, %s1481_s16   ;;  %s1481_s16 = sphi %s1579_s16, %s1837_s16   ;;  %s1477_s15 = sphi %s1577_s15, %s1836_s15   ;;  %s1473_s14 = sphi %s1575_s14, %s1835_s14   ;;  %s1469_s13 = sphi %s1573_s13, %s1834_s13  }
   0x8   : > { %s1598_s19 = sadd.s32 1, %s1481_s16   ;;  %s225_s20 = sadd.s32 1, %s1477_s15 }
   0x9   : > { %s222_s21 = ssub.s32 %s1481_s16, %s1598_s19  ;;  %p235_p0 = scmp.ne.s32.totalorder %s1477_s15, %s1473_s14 }
   0xa   : > { %p223_p1 = scmp.eq.s32.totalorder %s222_s21, 0  ;;  %p236_p2 = scmp.eq.s32.totalorder %s1594_s17, 1 }
   0xb   : > { %p241_p3 = scmp.ne.s32.totalorder %s1473_s14, %s1469_s13  ;;  %p242_p4 = scmp.eq.s32.totalorder %s1099_s18, 1 }
   0xc   : > { %s1609_s22 = scalar_select %p223_p1, %s1477_s15, %s225_s20  }
   0xd   : > { %p1611_p5 = por %p236_p2, %p235_p0  ;;  %p1615_p6 = por %p242_p4, %p241_p3 }
   0xe   : > { %p1102_p7 = scmp.ge.s32.totalorder %s1481_s16, 1  ;;  %p327_p8 = scmp.lt.s32.totalorder %s1481_s16, 3 }
  0x10   : > { %p328_p9 = pnand %p1102_p7, %p327_p8 }
  0x11   : > { %s1831_s1 = sld [smem:[#allocation7_spill]] (!%p328_p9)  ;;  %s1631_s11 = sshll.u32 (!%p328_p9), %s1594_s17, 1  ;;  %vm410_vm0 = vcmask (!%p328_p9), 261120   ;;  %v593_v20 = vld [vmem:[%s1818_s3] sm:$0xff] (!%p328_p9)  ;;  %v594_v21 = vld [vmem:[%s1818_s3 + $0x8] sm:$0xff] (!%p328_p9)  ;;  %vm509_vm1 = vcmask (!%p328_p9), 523264  }
  0x12   : > { %331 = sbr.rel (%p328_p9) target bundleno = 1096 (0x448), region = 56  ;;  %p378_p10 = scmp.lt.s32.totalorder (!%p328_p9), %s1631_s11, 2  ;;  %v1251_v22 = vpack.c.bf16 (!%p328_p9), %v594_v21, %v593_v20  ;;  %v1107_v23 = vld [vmem:[%s1820_s5] ss:$0 sm:$0xff] (!%p328_p9)  ;;  %v595_v30 = vld [vmem:[%s1818_s3 + $0x10] sm:$0xff] (!%p328_p9)  ;;  %v596_v31 = vld [vmem:[%s1818_s3 + $0x18] sm:$0xff] (!%p328_p9) }
  0x13   : > { %s1832_s2 = sld [smem:[#allocation8_spill]] (!%p328_p9)  ;;  %s1833_s0 = sld [smem:[#allocation6_spill]] (!%p328_p9)  ;;  %v1255_v32 = vpack.c.bf16 (!%p328_p9), %v596_v31, %v595_v30  ;;  %v710_v33 = vld [vmem:[%s1819_s4] sm:$0xff] (!%p328_p9)  ;;  %v711_v34 = vld [vmem:[%s1819_s4 + $0x8] sm:$0xff] (!%p328_p9)  ;;  %v712_v41 = vld [vmem:[%s1819_s4 + $0x10] sm:$0xff] (!%p328_p9)  ;;  %vm685_vm2 = vcmask (!%p328_p9), 195584  }
  0x14   : > { %v1259_v35 = vpack.c.bf16 (!%p328_p9), %v711_v34, %v710_v33  ;;  %v1110_v36 = vld [vmem:[%s1821_s6] ss:$0 sm:$0xff] (!%p328_p9)  ;;  %v713_v42 = vld [vmem:[%s1819_s4 + $0x18] sm:$0xff] (!%p328_p9)  ;;  %vm796_vm3 = vcmask (!%p328_p9), 56320   ;;  %s364_s28 = sand.u32 (!%p328_p9), 1, %s1473_s14  }
  0x15   : > { %v1263_v45 = vpack.c.bf16 (!%p328_p9), %v713_v42, %v712_v41  ;;  %v1113_v46 = vld [vmem:[%s1822_s7] ss:$0 sm:$0xff] (!%p328_p9)  ;;  %s1724_s18 = scalar_lea.sflag (!%p328_p9), [#allocation3], %s364_s28 }
  0x16   : > { %v1116_v52 = vld [vmem:[%s1823_s8] ss:$0 sm:$0xff] (!%p328_p9) }
  0x17   : > { %v399_v0 = vld [vmem:[%s1831_s1] sm:$0xff] (!%p328_p9)  ;;  %v400_v1 = vld [vmem:[%s1831_s1 + $0x8] sm:$0xff] (!%p328_p9)  ;;  %v401_v2 = vld [vmem:[%s1831_s1 + $0x10] sm:$0xff] (!%p328_p9) }
  0x18   : > { %v1227_v3 = vpack.c.bf16 (!%p328_p9), %v400_v1, %v399_v0  ;;  %v402_v4 = vld [vmem:[%s1831_s1 + $0x18] sm:$0xff] (!%p328_p9) }
  0x19   : > { %v494_v5 = vld [vmem:[%s1832_s2] sm:$0xff]  ;;  %v495_v6 = vld [vmem:[%s1832_s2 + $0x8] sm:$0xff]  ;;  %v1231_v7 = vpack.c.bf16 %v402_v4, %v401_v2  ;;  %v496_v9 = vld [vmem:[%s1832_s2 + $0x10] sm:$0xff]  ;;  %s379_s12 = scalar_select %p378_p10, %s1631_s11, 2 }
  0x1a   : > { %v1235_v8 = vpack.c.bf16 %v495_v6, %v494_v5  ;;  %v497_v10 = vld [vmem:[%s1832_s2 + $0x18] sm:$0xff]  ;;  %1228 = vmatprep.subr.bf16.mxu0 %v1227_v3  ;;  %v498_v12 = vld [vmem:[%s1832_s2 + $0x20] sm:$0xff]  ;;  %v499_v13 = vld [vmem:[%s1832_s2 + $0x28] sm:$0xff]  ;;  %s834_s20 = ssub.s32 (%p1611_p5), 3, %s1631_s11 }
  0x1b   : > { %v1239_v11 = vpack.c.bf16 %v497_v10, %v496_v9  ;;  %1230 = vmatpush3.bf16.msra.mxu0 %v1227_v3  ;;  %s1106_s26 = sshll.u32 %s379_s12, 3  ;;  %v1243_v14 = vpack.c.bf16 %v499_v13, %v498_v12  ;;  %v500_v17 = vld [vmem:[%s1832_s2 + $0x30] sm:$0xff]  ;;  %v501_v18 = vld [vmem:[%s1832_s2 + $0x38] sm:$0xff]  ;;  %p835_p11 = scmp.lt.s32.totalorder (%p1611_p5), %s834_s20, 2 }
  0x1c   : > { %1236 = vmatprep.subr.bf16.mxu1 %v1235_v8  ;;  %1232 = vmatprep.subr.bf16.mxu0 %v1231_v7  ;;  %s381_s29 = scalar_lea.vmem %s1833_s0, %s1106_s26  ;;  %v1247_v19 = vpack.c.bf16 %v501_v18, %v500_v17 }
  0x1d   : > { %1238 = vmatpush3.bf16.msra.mxu1 %v1235_v8  ;;  %v397_v15 = vld [vmem:[%s381_s29] sm:$0xff]  ;;  %v398_v16 = vld [vmem:[%s381_s29 + $0x8] sm:$0xff]  ;;  %s1103_s29 = sshll.u32 %s364_s28, 4 }
  0x1e   : > { %1240 = vmatprep.subr.bf16.mxu1 %v1239_v11  ;;  %1183 = vmatprep.mubr.msk.f32.mxu0 %vm410_vm0, %v397_v15  ;;  %s366_s30 = scalar_lea.vmem [#allocation2], %s1103_s29  ;;  %s1718_s12 = scalar_lea.vmem [#allocation4], %s1103_s29  }
  0x1f   : > { %1234 = vmatpush3.bf16.msra.mxu0 %v1231_v7 }
  0x20   : > { %1252 = vmatprep.subr.bf16.mxu0 %v1251_v22 }
  0x21   : > { %1242 = vmatpush3.bf16.msra.mxu1 %v1239_v11 }
  0x22   : > { %1244 = vmatprep.subr.bf16.mxu1 %v1243_v14  ;;  %1184 = vmatmul.mubr.msk.f32.vlgmr.msra.gmra.mrb[0].mxu0 %vm410_vm0, %v398_v16 }
  0x23   : > { %1254 = vmatpush3.bf16.msra.mxu0 %v1251_v22 }
  0x24   : > { %1256 = vmatprep.subr.bf16.mxu0 %v1255_v32 }
  0x25   : > { %1246 = vmatpush3.bf16.msra.mxu1 %v1243_v14 }
  0x26   : > { %1248 = vmatprep.subr.bf16.mxu1 %v1247_v19 }
  0x27   : > { %1258 = vmatpush3.bf16.msra.mxu0 %v1255_v32 }
  0x28   : > { %1260 = vmatprep.subr.bf16.mxu0 %v1259_v35 }
  0x29   : > { %1250 = vmatpush3.bf16.msra.mxu1 %v1247_v19 }
  0xf5   : > { %v1185_v24 = vpop.f32.mrb[0].mxu0 }
  0xf6   : > { %v489_v25 = vadd.f32 %v1185_v24, %v1107_v23  ;;  %v483_v26 = vpop.f32.mrb[1].mxu0 }
  0xf7   : > { %v484_v27 = vadd.f32 %v1107_v23, %v483_v26 }
  0xf8   : > { %v493_v29 = vmax.f32 %v489_v25, 0.0 }
  0xf9   : > { %v492_v28 = vmax.f32 %v484_v27, 0.0 }
  0xfb   : > { %1202 = vmatprep.mubr.msk.f32.mxu1 %vm509_vm1, %v492_v28 }
  0xfc   : > { %1203 = vmatmul.mubr.msk.f32.vlgmr.msra.gmra.mrb[0].mxu1 %vm509_vm1, %v493_v29 }
 0x1cf   : > { %v1204_v37 = vpop.f32.mrb[0].mxu1 }
 0x1d0   : > { %v588_v38 = vadd.f32 %v1204_v37, %v1110_v36  ;;  %v582_v39 = vpop.f32.mrb[1].mxu1 }
 0x1d1   : > { %v583_v40 = vadd.f32 %v1110_v36, %v582_v39 }
 0x1d2   : > { %v592_v44 = vmax.f32 %v588_v38, 0.0 }
 0x1d3   : > { %v591_v43 = vmax.f32 %v583_v40, 0.0 }
 0x1d5   : > { %1213 = vmatprep.mubr.msk.f32.mxu0 %vm410_vm0, %v591_v43 }
 0x1d6   : > { %1214 = vmatmul.mubr.msk.f32.vlgmr.msra.gmra.mrb[2].mxu0 %vm410_vm0, %v592_v44 }
 0x1d7   : > { %1262 = vmatpush3.bf16.msra.mxu0 %v1259_v35  ;;  %1224 = vmatprep.mubr.msk.f32.mxu0 %vm410_vm0, %v591_v43 }
 0x1d8   : > { %1264 = vmatprep.subr.bf16.mxu0 %v1263_v45 }
 0x1db   : > { %1266 = vmatpush3.bf16.msra.mxu0 %v1263_v45 }
 0x1de   : > { %1225 = vmatmul.mubr.msk.f32.vlgmr.msra.gmra.mrb[4].mxu0 %vm410_vm0, %v592_v44 }
 0x2a9   : > { %v1215_v47 = vpop.f32.mrb[2].mxu0 }
 0x2aa   : > { %v676_v48 = vpop.f32.mrb[3].mxu0  ;;  %v682_v50 = vadd.f32 %v1215_v47, %v1113_v46 }
 0x2ab   : > { %v677_v49 = vadd.f32 %v1113_v46, %v676_v48 }
 0x2ac   : > { %v689_v54 = vsel %vm685_vm2, %v682_v50, -inf }
 0x2ad   : > { %v686_v51 = vsel %vm685_vm2, %v677_v49, -inf }
 0x2ae   : > { %687 = vmax.xlane.f32.xlu0 %v686_v51 }
 0x2b1   : > { %v1226_v53 = vpop.f32.mrb[4].mxu0 }
 0x2b2   : > { %v787_v55 = vpop.f32.mrb[5].mxu0  ;;  %690 = vmax.xlane.f32.xlu0 %v689_v54  ;;  %v793_v57 = vadd.f32 %v1226_v53, %v1116_v52 }
 0x2b3   : > { %v788_v56 = vadd.f32 %v1116_v52, %v787_v55 }
 0x2b4   : > { %v800_v59 = vsel %vm796_vm3, %v793_v57, -inf }
 0x2b5   : > { %v797_v58 = vsel %vm796_vm3, %v788_v56, -inf }
 0x2b6   : > { %798 = vmax.xlane.f32.xlu1 %v797_v58 }
 0x2ba   : > { %801 = vmax.xlane.f32.xlu1 %v800_v59 }
 0x33b   : > { %v688_v60 = vpop.xlane.xlu0 %687 }
 0x33c   : > { %v692_v61 = vsub.f32 %v677_v49, %v688_v60 }
 0x33e   : > { %v694_v62 = vmul.f32 1.442695, %v692_v61 }
 0x33f   : > { %v691_v63 = vpop.xlane.xlu0 %690 }
 0x340   : > { %1371 = vpow2.f32 %v694_v62  ;;  %v693_v0 = vsub.f32 %v682_v50, %v691_v63 }
 0x342   : > { %v696_v1 = vmul.f32 1.442695, %v693_v0 }
 0x343   : > { %v799_v2 = vpop.xlane.xlu1 %798 }
 0x344   : > { %1373 = vpow2.f32 %v696_v1  ;;  %v803_v3 = vsub.f32 %v788_v56, %v799_v2 }
 0x346   : > { %v805_v4 = vmul.f32 1.442695, %v803_v3 }
 0x347   : > { %v802_v5 = vpop.xlane.xlu1 %801 }
 0x348   : > { %1375 = vpow2.f32 %v805_v4  ;;  %v804_v6 = vsub.f32 %v793_v57, %v802_v5 }
 0x34a   : > { %v1372_v7 = vpop.eup %1371  ;;  %v807_v8 = vmul.f32 1.442695, %v804_v6 }
 0x34b   : > { %v698_v9 = vsel %vm685_vm2, %v1372_v7, 0.0 }
 0x34c   : > { %1377 = vpow2.f32 %v807_v8  ;;  %699 = vadd.xlane.f32.xlu0 %v698_v9 }
 0x34e   : > { %v1374_v10 = vpop.eup %1373 }
 0x34f   : > { %v701_v11 = vsel %vm685_vm2, %v1374_v10, 0.0 }
 0x350   : > { %702 = vadd.xlane.f32.xlu1 %v701_v11 }
 0x352   : > { %v1376_v12 = vpop.eup %1375 }
 0x353   : > { %v809_v13 = vsel %vm796_vm3, %v1376_v12, 0.0 }
 0x354   : > { %810 = vadd.xlane.f32.xlu0 %v809_v13 }
 0x356   : > { %v1378_v14 = vpop.eup %1377 }
 0x357   : > { %v812_v15 = vsel %vm796_vm3, %v1378_v14, 0.0 }
 0x358   : > { %813 = vadd.xlane.f32.xlu1 %v812_v15 }
 0x3d9   : > { %v700_v16 = vpop.xlane.xlu0 %699 }
 0x3da   : > { %1379 = vrcp.f32 %v700_v16 }
 0x3dd   : > { %v703_v17 = vpop.xlane.xlu1 %702 }
 0x3de   : > { %1381 = vrcp.f32 %v703_v17 }
 0x3e1   : > { %v811_v18 = vpop.xlane.xlu0 %810 }
 0x3e2   : > { %1383 = vrcp.f32 %v811_v18 }
 0x3e4   : > { %v1380_v19 = vpop.eup %1379 }
 0x3e5   : > { %v706_v20 = vmul.f32 %v1380_v19, %v1372_v7  ;;  %v814_v21 = vpop.xlane.xlu1 %813 }
 0x3e6   : > { %1385 = vrcp.f32 %v814_v21 }
 0x3e7   : > { %708 = vst.msk [vmem:[%s366_s30] sm:$0xff] %vm685_vm2, %v706_v20 }
 0x3e8   : > { %v1382_v22 = vpop.eup %1381 }
 0x3e9   : > { %v707_v23 = vmul.f32 %v1382_v22, %v1374_v10 }
 0x3eb   : > { %709 = vst.msk [vmem:[%s366_s30 + $0x8] sm:$0xff] %vm685_vm2, %v707_v23 }
 0x3ec   : > { %v1384_v24 = vpop.eup %1383 }
 0x3ed   : > { %v817_v25 = vmul.f32 %v1384_v24, %v1376_v12  ;;  %832 = sbr.rel (!%p1611_p5) target bundleno = 1040 (0x410), region = 60 }
 0x3ef   : > { %819 = vst.msk [vmem:[%s1718_s12] sm:$0xff] %vm796_vm3, %v817_v25 }
 0x3f0   : > { %v1386_v26 = vpop.eup %1385 }
 0x3f1   : > { %v818_v27 = vmul.f32 %v1386_v26, %v1378_v14 }
 0x3f3   : > { %820 = vst.msk [vmem:[%s1718_s12 + $0x8] sm:$0xff] %vm796_vm3, %v818_v27 }
 0x3f4   : > { %s1839_s20 = smov (!%p835_p11, %s834_s20), 2 }
 0x3f5   : > { %s1729_s21 = sshll.u32 %s1839_s20, 7 }
 0x3f6   : > { %s839_s25 = ssub.s32 256, %s1729_s21 }
 0x3f7   : > { %840 = vsyncadd %s1724_s18, %s839_s25  ;;  %p1123_p12 = scmp.ne.s32.totalorder %s1729_s21, 0  ;;  %s1143_s26 = sshll.u32 %s1594_s17, 8 }
 0x3f8   : > { %s1738_s29 = scalar_lea.hbm %s1824_s9, %s1143_s26  ;;  %s845_s0 = sshll.u32 %s366_s30, 4  ;;  %s1740_s0 = int_to_ptr.vmem [resolvable:$true] %s845_s0 }
 0x3f9   : > { %s1387_s20 = scalar_lea.vmem %s1740_s0, %s1729_s21  ;;  %s1515_s25 = smov [#allocation2]  }
 0x3fa   : > { %p1388_p13 = scmp.ne.s32.totalorder %s1740_s0, %s1387_s20  ;;  %s1391_s1 = sshll.u32 %s1515_s25, 4  ;;  %s1392_s1 = int_to_ptr.vmem [resolvable:$false] %s1391_s1 }
 0x3fb   : > { %s1393_s2 = scalar_lea.vmem %s1392_s1, 512  ;;  %p1394_p2 = scmp.lt.s32.totalorder %s1740_s0, %s1392_s1 }
 0x3fc   : > { %p1389_p0 = pnand %p1388_p13, %p1123_p12  ;;  %p1395_p3 = scmp.lt.s32.totalorder %s1393_s2, %s1387_s20 }
 0x3fe   : > { %p1390_p1 = pneg %p1389_p0  ;;  %p1396_p4 = por %p1395_p3, %p1394_p2 }
 0x400   : > { %p1397_p7 = pnand %p1396_p4, %p1390_p1 }
 0x402   : > { %1400 = shalt.err (!%p1397_p7)
}
 0x403   : > { %s1401_s30 = scalar_lea.hbm %s1738_s29, %s1729_s21  ;;  %s1405_s28 = scalar_lea.hbm %s1824_s9, 384 }
 0x404   : > { %p1402_p8 = scmp.ne.s32.totalorder %s1738_s29, %s1401_s30  ;;  %p1406_p11 = scmp.lt.u32.totalorder %s1738_s29, %s1824_s9 }
 0x405   : > { %p1407_p13 = scmp.lt.u32.totalorder %s1405_s28, %s1401_s30  ;;  %p1409_p1 = scmp.lt.u32.totalorder %s1401_s30, %s1738_s29 }
 0x406   : > { %p1403_p9 = pnand %p1402_p8, %p1123_p12 }
 0x407   : > { %p1408_p0 = por %p1407_p13, %p1406_p11 }
 0x408   : > { %p1404_p10 = pneg %p1403_p9 }
 0x409   : > { %p1410_p2 = por %p1409_p1, %p1408_p0 }
 0x40b   : > { %p1411_p3 = pnand %p1410_p2, %p1404_p10 }
 0x40d   : > { %1414 = shalt.err (!%p1411_p3)
}
 0x40e   : > { %s1516_s20 = smov 128   ;;  %s1517_s25 = smov 8  }
 0x40f   : > { %851 = dma.vmem_to_hbm [thread:$0]  (%p1123_p12), %s1740_s0, %s1729_s21, %s1738_s29, %s1724_s18, %s1516_s20, %s1516_s20, %s1517_s25  }
 0x410 PF: > { %854 = sbr.rel (!%p1611_p5) target bundleno = 1096 (0x448), region = 64  ;;  %s856_s26 = ssub.s32 (%p1611_p5), 3, %s1631_s11 }
 0x411   : > { %s1144_s30 = sshll.u32 (%p1611_p5), %s1594_s17, 4  ;;  %p857_p4 = scmp.lt.s32.totalorder (%p1611_p5), %s856_s26, 2 }
 0x412   : > { %s1774_s1 = scalar_lea.vmem (%p1611_p5), %s1825_s10, %s1144_s30  }
 0x417   : > { %s1841_s26 = smov (!%p857_p4, %s856_s26), 2 }
 0x418   : > { %s1128_s2 = sshll.u32 %s1841_s26, 7 }
 0x419   : > { %p1131_p7 = scmp.eq.s32.totalorder %s1128_s2, 0 }
 0x41a   : > { %s1780_s0 = sshrl.u32 (!%p1131_p7), %s1841_s26, 1 }
 0x41b   : > { %865 = sbr.rel (%p1131_p7) target bundleno = 1096 (0x448), region = 68  ;;  %p1132_p5 = scmp.le.s32.totalorder (!%p1131_p7), %s1780_s0, 0 }
 0x422   : > { %1046 = sbr.rel (%p1132_p5) target bundleno = 1075 (0x433), region = 157  ;;  %s1483_s17 = smov (!%p1132_p5), %s1774_s1  }
 0x423   : > { %s1487_s23 = smov (!%p1132_p5), %s1718_s12   ;;  %s1491_s11 = smov (!%p1132_p5), 0  }
 0x424   : > { %s1495_s18 = smov (!%p1132_p5), 0  }
 0x429 LB: >> { %v929_v28 = vld [vmem:[%s1489_s23] sm:$0xff]  ;;  %v931_v29 = vld [vmem:[%s1489_s23 + $0x8] sm:$0xff]  ;;  %s933_s21 = sadd.s32 1, %s1493_s11  ;;  %s923_s18 = sadd.s32 1, %s1497_s18   ;;  %s1497_s18 = sphi %s1495_s18, %s923_s18   ;;  %s1493_s11 = sphi %s1491_s11, %s1492_s11   ;;  %s1489_s23 = sphi %s1487_s23, %s938_s23   ;;  %s1485_s17 = sphi %s1483_s17, %s939_s17  }
 0x42a   : >> { %930 = vst [vmem:[%s1485_s17] sm:$0xff] %v929_v28  ;;  %932 = vst [vmem:[%s1485_s17 + $0x8] sm:$0xff] %v931_v29  ;;  %p934_p12 = scmp.ge.s32.totalorder %s933_s21, %s1780_s0  ;;  %p922_p8 = scmp.ge.s32.totalorder %s923_s18, %s1780_s0 }
 0x42c   : >> { %s1843_s21 = smov (%p934_p12, %s933_s21), 0  ;;  %925 = sbr.rel (!%p922_p8) target bundleno = 1065 (0x429), region = 163 }
 0x42d   : >> { %s1133_s29 = sshll.u32 %s1843_s21, 4  ;;  %s1492_s11 = smov %s1843_s21  }
 0x42e   : >> { %s938_s23 = scalar_lea.vmem %s1718_s12, %s1133_s29 [#allocation4]   ;;  %s939_s17 = scalar_lea.vmem %s1774_s1, %s1133_s29  }
 0x433 PF: > { %s1790_s20 = sand.u32 1, %s1841_s26   ;;  %s1145_s25 = sshll.u32 %s1780_s0, 4 }
 0x434   : > { %s944_s30 = scalar_lea.vmem %s1718_s12, %s1145_s25 [#allocation4]   ;;  %s946_s27 = scalar_lea.vmem %s1774_s1, %s1145_s25  }
 0x435   : > { %p1138_p9 = scmp.le.s32.totalorder %s1790_s20, 0 }
 0x436   : > { %s1499_s28 = smov (!%p1138_p9), %s946_s27   ;;  %s1503_s2 = smov (!%p1138_p9), %s944_s30  }
 0x437   : > { %1060 = sbr.rel (%p1138_p9) target bundleno = 1096 (0x448), region = 168  ;;  %s1507_s17 = smov (!%p1138_p9), 0  }
 0x438   : > { %s1511_s23 = smov (!%p1138_p9), 0  }
 0x43e LB: >> { %v956_v30 = vld [vmem:[%s1505_s2] sm:$0xff]  ;;  %s958_s26 = sadd.s32 1, %s1509_s17  ;;  %s950_s23 = sadd.s32 1, %s1513_s23   ;;  %s1513_s23 = sphi %s1511_s23, %s950_s23   ;;  %s1509_s17 = sphi %s1507_s17, %s1508_s17   ;;  %s1505_s2 = sphi %s1503_s2, %s963_s2   ;;  %s1501_s28 = sphi %s1499_s28, %s964_s28  }
 0x43f   : >> { %957 = vst [vmem:[%s1501_s28] sm:$0xff] %v956_v30  ;;  %p959_p10 = scmp.ge.s32.totalorder %s958_s26, %s1790_s20  ;;  %p949_p11 = scmp.ge.s32.totalorder %s950_s23, %s1790_s20 }
 0x441   : >> { %s1845_s26 = smov (%p959_p10, %s958_s26), 0  ;;  %952 = sbr.rel (!%p949_p11) target bundleno = 1086 (0x43e), region = 174 }
 0x442   : >> { %s1139_s12 = sshll.u32 %s1845_s26, 3  ;;  %s1508_s17 = smov %s1845_s26  }
 0x443   : >> { %s963_s2 = scalar_lea.vmem %s944_s30, %s1139_s12 [#allocation4]   ;;  %s964_s28 = scalar_lea.vmem %s946_s27, %s1139_s12  }
 0x448 PF: > { %p1272_p13 = scmp.ge.s32.totalorder %s1481_s16, 2  ;;  %s976_s1 = sand.u32 1, %s1469_s13  }
 0x449   : > { %s977_s0 = scalar_lea.sflag [#allocation3], %s976_s1 }
 0x44a   : > { %p1269_p0 = pnand %p1272_p13, %p1615_p6 }
 0x44c   : > { %1464 = dma.done.wait (!%p1269_p0), %s977_s0, 256  }
 0x44d   : > { %1466 = vsyncadd (!%p1269_p0), %s977_s0, 4294967040  ;;  %p21_p1 = scmp.ge.s32.totalorder %s1598_s19, 4   ;;  %s1834_s13 = smov %s1473_s14 }
 0x44e   : > { %s1835_s14 = smov %s1477_s15  ;;  %s1836_s15 = smov %s1609_s22 }
 0x44f   : > { %s1837_s16 = smov %s1598_s19  ;;  %23 = sbr.rel (!%p21_p1) target bundleno = 7 (0x7), region = 185 }
 0x456   :  { %989 = vsyncpa [#allocation3], 1 }
 0x457   :  { %991 = vsyncpa [#allocation3 + $0x1], 1 }

</bundles_post_ra>
